<compile_context>
chip_gen: v7x
topology: tpu7x:2x2x1
jax: 0.10.0
libtpu: 0.0.40
codegen_flags: <defaults>
</compile_context>

<pallas_src>
import functools

import jax
import jax.numpy as jnp
from jax.experimental import pallas as pl
from jax.experimental.pallas import tpu as pltpu

EPS = 1e-5

_V5E_SCOPED_VMEM_DEFAULT = 16 << 20   # smallest default scoped-VMEM across gens
_VMEM_BUDGET = 40 << 20               # safe under v7x's 64 MiB/TC physical VMEM


def _round_up(x, m):
    return (x + m - 1) // m * m


def _cdiv(a, b):
    return -(-a // b)


# ---------------------------------------------------------------------------
# Kernel
# ---------------------------------------------------------------------------
def _mish_fast(z):
    """mish(z) = z * tanh(softplus(z)) = z * n / (n + 2),  n = e^z (e^z + 2).

    One exp + one approx reciprocal (both EUP slot) instead of the
    3-transcendental exp+log1p+tanh form. For z > 20, tanh(softplus(z)) == 1
    to f32 precision, so return z directly (clamp also prevents exp overflow).
    """
    zc = jnp.minimum(z, 20.0)
    e = jnp.exp(zc)
    n = e * (e + 2.0)
    t = n * pl.reciprocal(n + 2.0, approx=True)
    return jnp.where(z > 20.0, z, z * t)


def mlp_kernel(x_ref,
               w1_ref, b1_ref,
               w2_ref, b2_ref,
               w3_ref, b3_ref,
               w4_ref, b4_ref,
               o_ref):
    h = x_ref[...]                       # (TB, input_dim), f32 or bf16
    for w_ref, b_ref in ((w1_ref, b1_ref), (w2_ref, b2_ref), (w3_ref, b3_ref)):
        z = jnp.dot(h.astype(jnp.bfloat16), w_ref[...],
                    preferred_element_type=jnp.float32) + b_ref[...]
        h = _mish_fast(z)                # Dropout(0.05) == identity at eval
    o_ref[...] = jnp.dot(h.astype(jnp.bfloat16), w4_ref[...],
                         preferred_element_type=jnp.float32) + b4_ref[...]


# ---------------------------------------------------------------------------
# Parameter construction / folding
# ---------------------------------------------------------------------------
def init_mlp_params(key, input_dim, output_dim=1, layers=(256, 128, 64)):
    """Deterministic init matching the PyTorch module.

    Linear weights: kaiming_normal_(a=0.1, mode='fan_in', nonlinearity='tanh')
      -> std = gain / sqrt(fan_in), gain(tanh) = 5/3. (stored transposed: (in, out))
    Linear bias: PyTorch default uniform(-1/sqrt(fan_in), 1/sqrt(fan_in)).
    BatchNorm1d: gamma=1, beta=0, running_mean=0, running_var=1.
    """
    dims = [input_dim] + list(layers)
    params = []
    gain = 5.0 / 3.0
    for d_in, d_out in zip(dims[:-1], dims[1:]):
        key, kw, kb = jax.random.split(key, 3)
        std = gain / jnp.sqrt(float(d_in))
        w = jax.random.normal(kw, (d_in, d_out), jnp.float32) * std
        bound = 1.0 / jnp.sqrt(float(d_in))
        b = jax.random.uniform(kb, (1, d_out), jnp.float32, -bound, bound)
        params.extend([w, b,
                       jnp.ones((1, d_out), jnp.float32),    # gamma
                       jnp.zeros((1, d_out), jnp.float32),   # beta
                       jnp.zeros((1, d_out), jnp.float32),   # running_mean
                       jnp.ones((1, d_out), jnp.float32)])   # running_var
    d_in = dims[-1]
    key, kw, kb = jax.random.split(key, 3)
    std = gain / jnp.sqrt(float(d_in))
    w = jax.random.normal(kw, (d_in, output_dim), jnp.float32) * std
    bound = 1.0 / jnp.sqrt(float(d_in))
    b = jax.random.uniform(kb, (1, output_dim), jnp.float32, -bound, bound)
    params.extend([w, b])
    return params


def fold_bn_into_linears(params, compute_dtype=jnp.bfloat16):
    """Fold eval-mode BatchNorm into the *following* Linear layer (exact).

    BN(m) = a*m + c with a = gamma * rsqrt(var+eps), c = beta - a*mean, so
      BN(m) @ W + b = m @ (a[:, None] * W) + (c @ W + b).
    Returns [w1, b1, w2', b2', w3', b3', w4', b4']; weights cast to
    `compute_dtype` (MXU input dtype), biases kept f32.
    """
    w1, b1, g1, be1, m1, v1 = params[0:6]
    w2, b2, g2, be2, m2, v2 = params[6:12]
    w3, b3, g3, be3, m3, v3 = params[12:18]
    w4, b4 = params[18:20]

    def _ac(g, be, m, v):
        a = g * jax.lax.rsqrt(v + EPS)
        return a, be - a * m

    a1, c1 = _ac(g1, be1, m1, v1)
    a2, c2 = _ac(g2, be2, m2, v2)
    a3, c3 = _ac(g3, be3, m3, v3)

    ws = [w1,
          a1.reshape(-1, 1) * w2,
          a2.reshape(-1, 1) * w3,
          a3.reshape(-1, 1) * w4]
    bs = [b1,
          b2 + c1 @ w2,
          b3 + c2 @ w3,
          b4 + c3 @ w4]

    out = []
    for w, b in zip(ws, bs):
        out.append(w.astype(compute_dtype))
        out.append(b.astype(jnp.float32))
    return out


# ---------------------------------------------------------------------------
# VMEM budgeting (lane-padded, per review: last dim pads to 128 lanes)
# ---------------------------------------------------------------------------
def _vmem_bytes(tb, d_in, hidden, d_out, x_itemsize):
    lane = lambda d: _round_up(d, 128)
    total = 0
    total += 2 * tb * lane(d_in) * x_itemsize      # x: double-buffered input stream
    total += 2 * tb * lane(d_out) * 4              # out: double-buffered f32 stream
    prev = d_in
    for d in list(hidden) + [d_out]:
        total += 2 * _round_up(prev, 16) * lane(d) * 2   # bf16 weights (2 bufs)
        total += 2 * 8 * lane(d) * 4                     # f32 bias rows (padded)
        prev = d
    widest = max(hidden)
    total += 4 * tb * lane(widest) * 4             # live f32 activations + Mish temps
    return total


def _select_tile(n, block_batch, sub, d_in, hidden, d_out, x_itemsize):
    """Adaptive batch tile: near-even split, >=2 steps when possible, VMEM-capped."""
    n_steps = max(1, _cdiv(n, block_batch))
    if n_steps == 1 and n >= 2 * sub:
        n_steps = 2                                # give both v7x TCs work
    tb = _round_up(_cdiv(n, n_steps), sub)
    # Cap tb so the lane-padded live set stays under the per-core VMEM budget.
    while tb > sub and _vmem_bytes(tb, d_in, hidden, d_out, x_itemsize) > _VMEM_BUDGET:
        tb = _round_up(_cdiv(tb, 2), sub)
    return tb


# ---------------------------------------------------------------------------
# Wrapper
# ---------------------------------------------------------------------------
@functools.partial(jax.jit, static_argnames=("block_batch",))
def mlp_forward(x, kernel_params, block_batch=2048):
    """x: (n, input_dim) f32 or bf16. kernel_params: output of fold_bn_into_linears."""
    n, d_in = x.shape
    hidden = tuple(kernel_params[2 * i].shape[-1] for i in range(3))
    d_out = kernel_params[-1].shape[-1]

    # bf16 packs two rows per sublane -> round batch tiles to 16 instead of 8.
    sub = 16 if x.dtype == jnp.bfloat16 else 8
    x_itemsize = jnp.dtype(x.dtype).itemsize

    tb = _select_tile(n, block_batch, sub, d_in, hidden, d_out, x_itemsize)
    n_pad = _round_up(n, tb)
    if n_pad != n:
        x = jnp.pad(x, ((0, n_pad - n), (0, 0)))
    grid = n_pad // tb

    # Explicit scoped-VMEM limit only when the estimate exceeds the smallest
    # default (v5e: 16 MiB); capped well under v7x's 64 MiB/TC physical.
    est = _vmem_bytes(tb, d_in, hidden, d_out, x_itemsize)
    cp_kwargs = dict(dimension_semantics=("parallel",))   # megacore split on v7x
    if est > _V5E_SCOPED_VMEM_DEFAULT:
        cp_kwargs["vmem_limit_bytes"] = min(
            _round_up(int(est * 1.25), 1 << 20), 56 << 20)

    resident = lambda i: (0, 0)   # weights/biases: fetched once, stay VMEM-resident
    in_specs = [pl.BlockSpec((tb, d_in), lambda i: (i, 0))]
    in_specs += [pl.BlockSpec(p.shape, resident) for p in kernel_params]

    out = pl.pallas_call(
        mlp_kernel,
        out_shape=jax.ShapeDtypeStruct((n_pad, d_out), jnp.float32),
        grid=(grid,),
        in_specs=in_specs,
        out_specs=pl.BlockSpec((tb, d_out), lambda i: (i, 0)),
        compiler_params=pltpu.CompilerParams(**cp_kwargs),
    )(x, *kernel_params)
    return out[:n]


# ---------------------------------------------------------------------------
# Pure-JAX reference (PyTorch eval() semantics, f32, unfolded BN)
# ---------------------------------------------------------------------------
def _mish_ref(z):
    sp = jnp.maximum(z, 0.0) + jnp.log1p(jnp.exp(-jnp.abs(z)))
    return z * jnp.tanh(sp)


def mlp_reference(x, params):
    h = x.astype(jnp.float32)
    for i in range(3):
        w, b, g, be, m, v = params[6 * i: 6 * i + 6]
        z = h @ w + b
        z = _mish_ref(z)
        h = (z - m) * jax.lax.rsqrt(v + EPS) * g + be
    w, b = params[-2:]
    return h @ w + b


if __name__ == "__main__":
    key = jax.random.PRNGKey(0)
    kx, kx2, kp = jax.random.split(key, 3)

    input_dim = 32
    params = init_mlp_params(kp, input_dim, output_dim=1, layers=(256, 128, 64))
    kparams = fold_bn_into_linears(params)

    # 1) Small batch, single grid step.
    x_small = jax.random.normal(kx, (8, input_dim), jnp.float32)
    out_small = jax.block_until_ready(mlp_forward(x_small, kparams))
    ref_small = mlp_reference(x_small, params)
    assert out_small.shape == (8, 1), out_small.shape
    # bf16 matmul inputs + approx reciprocal in Mish -> loosened tolerance vs f32 ref
    assert jnp.allclose(out_small, ref_small, atol=5e-2, rtol=5e-2)

    # 2) Ragged batch: exercises adaptive tile, multi-step grid, and padding slice.
    x_rag = jax.random.normal(kx2, (300, input_dim), jnp.float32)
    out_rag = jax.block_until_ready(mlp_forward(x_rag, kparams))
    ref_rag = mlp_reference(x_rag, params)
    assert out_rag.shape == (300, 1), out_rag.shape
    assert jnp.allclose(out_rag, ref_rag, atol=5e-2, rtol=5e-2)

    # 3) bf16 input path (producer-side bf16): sublane rounding switches to 16.
    x_bf16 = x_rag.astype(jnp.bfloat16)
    out_bf = jax.block_until_ready(mlp_forward(x_bf16, kparams))
    ref_bf = mlp_reference(x_bf16.astype(jnp.float32), params)
    assert out_bf.shape == (300, 1), out_bf.shape
    assert jnp.allclose(out_bf, ref_bf, atol=1e-1, rtol=1e-1)

    print("KERNEL_OK")
</pallas_src>

<mosaic_0001>
module attributes {stable_mosaic.version = 11 : i64} {
  func.func @mlp_kernel(%arg0: i32, %arg1: memref<8x32xf32, #tpu.memory_space<vmem>>, %arg2: memref<32x256xbf16, #tpu.memory_space<vmem>>, %arg3: memref<1x256xf32, #tpu.memory_space<vmem>>, %arg4: memref<256x128xbf16, #tpu.memory_space<vmem>>, %arg5: memref<1x128xf32, #tpu.memory_space<vmem>>, %arg6: memref<128x64xbf16, #tpu.memory_space<vmem>>, %arg7: memref<1x64xf32, #tpu.memory_space<vmem>>, %arg8: memref<64x1xbf16, #tpu.memory_space<vmem>>, %arg9: memref<1x1xf32, #tpu.memory_space<vmem>>, %arg10: memref<8x1xf32, #tpu.memory_space<vmem>>) attributes {dimension_semantics = [#tpu.dimension_semantics<parallel>], iteration_bounds = array<i64: 1>, scalar_prefetch = 0 : i64, scratch_operands = 0 : i64, tpu.core_type = #tpu.core_type<tc>, window_params = [{transform_indices = @transform_0, window_bounds = array<i64: 8, 32>}, {pipeline_mode = #tpu.pipeline_mode<synchronous>, transform_indices = @transform_1, window_bounds = array<i64: 32, 256>}, {pipeline_mode = #tpu.pipeline_mode<synchronous>, transform_indices = @transform_2, window_bounds = array<i64: 1, 256>}, {pipeline_mode = #tpu.pipeline_mode<synchronous>, transform_indices = @transform_3, window_bounds = array<i64: 256, 128>}, {pipeline_mode = #tpu.pipeline_mode<synchronous>, transform_indices = @transform_4, window_bounds = array<i64: 1, 128>}, {pipeline_mode = #tpu.pipeline_mode<synchronous>, transform_indices = @transform_5, window_bounds = array<i64: 128, 64>}, {pipeline_mode = #tpu.pipeline_mode<synchronous>, transform_indices = @transform_6, window_bounds = array<i64: 1, 64>}, {pipeline_mode = #tpu.pipeline_mode<synchronous>, transform_indices = @transform_7, window_bounds = array<i64: 64, 1>}, {pipeline_mode = #tpu.pipeline_mode<synchronous>, transform_indices = @transform_8, window_bounds = array<i64: 1, 1>}, {transform_indices = @transform_9, window_bounds = array<i64: 8, 1>}]} {
    %c0 = arith.constant 0 : index
    %c0_0 = arith.constant 0 : index
    %0 = vector.load %arg1[%c0, %c0_0] : memref<8x32xf32, #tpu.memory_space<vmem>>, vector<8x32xf32>
    %1 = arith.truncf %0 : vector<8x32xf32> to vector<8x32xbf16>
    %c0_1 = arith.constant 0 : index
    %c0_2 = arith.constant 0 : index
    %2 = vector.load %arg2[%c0_1, %c0_2] : memref<32x256xbf16, #tpu.memory_space<vmem>>, vector<32x256xbf16>
    %cst = arith.constant dense<0.000000e+00> : vector<8x256xf32>
    %3 = tpu.matmul %1, %2, %cst {dimension_numbers = #tpu.dot_dimension_numbers<[1], [0], [0], [1], [0, 0, 1, 1], [], []>} : vector<8x32xbf16>, vector<32x256xbf16>, vector<8x256xf32> -> vector<8x256xf32>
    %c0_3 = arith.constant 0 : index
    %c0_4 = arith.constant 0 : index
    %4 = vector.load %arg3[%c0_3, %c0_4] : memref<1x256xf32, #tpu.memory_space<vmem>>, vector<1x256xf32>
    %5 = vector.broadcast %4 : vector<1x256xf32> to vector<8x256xf32>
    %6 = arith.addf %3, %5 : vector<8x256xf32>
    %cst_5 = arith.constant 2.000000e+01 : f32
    %7 = vector.broadcast %cst_5 : f32 to vector<8x256xf32>
    %8 = arith.minimumf %6, %7 : vector<8x256xf32>
    %9 = math.exp %8 : vector<8x256xf32>
    %cst_6 = arith.constant 2.000000e+00 : f32
    %10 = vector.broadcast %cst_6 : f32 to vector<8x256xf32>
    %11 = arith.addf %9, %10 : vector<8x256xf32>
    %12 = arith.mulf %9, %11 : vector<8x256xf32>
    %cst_7 = arith.constant 2.000000e+00 : f32
    %13 = vector.broadcast %cst_7 : f32 to vector<8x256xf32>
    %14 = arith.addf %12, %13 : vector<8x256xf32>
    %15 = tpu.reciprocal %14 {approx = true} : vector<8x256xf32> -> vector<8x256xf32>
    %16 = arith.mulf %12, %15 : vector<8x256xf32>
    %cst_8 = arith.constant 2.000000e+01 : f32
    %17 = vector.broadcast %cst_8 : f32 to vector<8x256xf32>
    %18 = arith.cmpf ogt, %6, %17 : vector<8x256xf32>
    %19 = arith.mulf %6, %16 : vector<8x256xf32>
    %20 = arith.select %18, %6, %19 : vector<8x256xi1>, vector<8x256xf32>
    %21 = arith.truncf %20 : vector<8x256xf32> to vector<8x256xbf16>
    %c0_9 = arith.constant 0 : index
    %c0_10 = arith.constant 0 : index
    %22 = vector.load %arg4[%c0_9, %c0_10] : memref<256x128xbf16, #tpu.memory_space<vmem>>, vector<256x128xbf16>
    %cst_11 = arith.constant dense<0.000000e+00> : vector<8x128xf32>
    %23 = tpu.matmul %21, %22, %cst_11 {dimension_numbers = #tpu.dot_dimension_numbers<[1], [0], [0], [1], [0, 0, 1, 1], [], []>} : vector<8x256xbf16>, vector<256x128xbf16>, vector<8x128xf32> -> vector<8x128xf32>
    %c0_12 = arith.constant 0 : index
    %c0_13 = arith.constant 0 : index
    %24 = vector.load %arg5[%c0_12, %c0_13] : memref<1x128xf32, #tpu.memory_space<vmem>>, vector<1x128xf32>
    %25 = vector.broadcast %24 : vector<1x128xf32> to vector<8x128xf32>
    %26 = arith.addf %23, %25 : vector<8x128xf32>
    %cst_14 = arith.constant 2.000000e+01 : f32
    %27 = vector.broadcast %cst_14 : f32 to vector<8x128xf32>
    %28 = arith.minimumf %26, %27 : vector<8x128xf32>
    %29 = math.exp %28 : vector<8x128xf32>
    %cst_15 = arith.constant 2.000000e+00 : f32
    %30 = vector.broadcast %cst_15 : f32 to vector<8x128xf32>
    %31 = arith.addf %29, %30 : vector<8x128xf32>
    %32 = arith.mulf %29, %31 : vector<8x128xf32>
    %cst_16 = arith.constant 2.000000e+00 : f32
    %33 = vector.broadcast %cst_16 : f32 to vector<8x128xf32>
    %34 = arith.addf %32, %33 : vector<8x128xf32>
    %35 = tpu.reciprocal %34 {approx = true} : vector<8x128xf32> -> vector<8x128xf32>
    %36 = arith.mulf %32, %35 : vector<8x128xf32>
    %cst_17 = arith.constant 2.000000e+01 : f32
    %37 = vector.broadcast %cst_17 : f32 to vector<8x128xf32>
    %38 = arith.cmpf ogt, %26, %37 : vector<8x128xf32>
    %39 = arith.mulf %26, %36 : vector<8x128xf32>
    %40 = arith.select %38, %26, %39 : vector<8x128xi1>, vector<8x128xf32>
    %41 = arith.truncf %40 : vector<8x128xf32> to vector<8x128xbf16>
    %c0_18 = arith.constant 0 : index
    %c0_19 = arith.constant 0 : index
    %42 = vector.load %arg6[%c0_18, %c0_19] : memref<128x64xbf16, #tpu.memory_space<vmem>>, vector<128x64xbf16>
    %cst_20 = arith.constant dense<0.000000e+00> : vector<8x64xf32>
    %43 = tpu.matmul %41, %42, %cst_20 {dimension_numbers = #tpu.dot_dimension_numbers<[1], [0], [0], [1], [0, 0, 1, 1], [], []>} : vector<8x128xbf16>, vector<128x64xbf16>, vector<8x64xf32> -> vector<8x64xf32>
    %c0_21 = arith.constant 0 : index
    %c0_22 = arith.constant 0 : index
    %44 = vector.load %arg7[%c0_21, %c0_22] : memref<1x64xf32, #tpu.memory_space<vmem>>, vector<1x64xf32>
    %45 = vector.broadcast %44 : vector<1x64xf32> to vector<8x64xf32>
    %46 = arith.addf %43, %45 : vector<8x64xf32>
    %cst_23 = arith.constant 2.000000e+01 : f32
    %47 = vector.broadcast %cst_23 : f32 to vector<8x64xf32>
    %48 = arith.minimumf %46, %47 : vector<8x64xf32>
    %49 = math.exp %48 : vector<8x64xf32>
    %cst_24 = arith.constant 2.000000e+00 : f32
    %50 = vector.broadcast %cst_24 : f32 to vector<8x64xf32>
    %51 = arith.addf %49, %50 : vector<8x64xf32>
    %52 = arith.mulf %49, %51 : vector<8x64xf32>
    %cst_25 = arith.constant 2.000000e+00 : f32
    %53 = vector.broadcast %cst_25 : f32 to vector<8x64xf32>
    %54 = arith.addf %52, %53 : vector<8x64xf32>
    %55 = tpu.reciprocal %54 {approx = true} : vector<8x64xf32> -> vector<8x64xf32>
    %56 = arith.mulf %52, %55 : vector<8x64xf32>
    %cst_26 = arith.constant 2.000000e+01 : f32
    %57 = vector.broadcast %cst_26 : f32 to vector<8x64xf32>
    %58 = arith.cmpf ogt, %46, %57 : vector<8x64xf32>
    %59 = arith.mulf %46, %56 : vector<8x64xf32>
    %60 = arith.select %58, %46, %59 : vector<8x64xi1>, vector<8x64xf32>
    %61 = arith.truncf %60 : vector<8x64xf32> to vector<8x64xbf16>
    %c0_27 = arith.constant 0 : index
    %c0_28 = arith.constant 0 : index
    %62 = vector.load %arg8[%c0_27, %c0_28] : memref<64x1xbf16, #tpu.memory_space<vmem>>, vector<64x1xbf16>
    %cst_29 = arith.constant dense<0.000000e+00> : vector<8x1xf32>
    %63 = tpu.matmul %61, %62, %cst_29 {dimension_numbers = #tpu.dot_dimension_numbers<[1], [0], [0], [1], [0, 0, 1, 1], [], []>} : vector<8x64xbf16>, vector<64x1xbf16>, vector<8x1xf32> -> vector<8x1xf32>
    %c0_30 = arith.constant 0 : index
    %c0_31 = arith.constant 0 : index
    %64 = vector.load %arg9[%c0_30, %c0_31] : memref<1x1xf32, #tpu.memory_space<vmem>>, vector<1x1xf32>
    %65 = vector.broadcast %64 : vector<1x1xf32> to vector<8x1xf32>
    %66 = arith.addf %63, %65 : vector<8x1xf32>
    %c0_32 = arith.constant 0 : index
    %c0_33 = arith.constant 0 : index
    %67 = vector.load %arg10[%c0_32, %c0_33] : memref<8x1xf32, #tpu.memory_space<vmem>>, vector<8x1xf32>
    tpu.vector_store %arg10[%c0_32, %c0_33], %66 {strides = array<i32>} : memref<8x1xf32, #tpu.memory_space<vmem>>, vector<8x1xf32>,
    return
  }
  func.func @transform_0(%arg0: i32) -> (i32, i32) {
    %c0_i32 = arith.constant 0 : i32
    %c0_i32_0 = arith.constant 0 : i32
    return %arg0, %c0_i32 : i32, i32
  }
  func.func @transform_1(%arg0: i32) -> (i32, i32) {
    %c0_i32 = arith.constant 0 : i32
    %c0_i32_0 = arith.constant 0 : i32
    %c0_i32_1 = arith.constant 0 : i32
    return %c0_i32, %c0_i32_0 : i32, i32
  }
  func.func @transform_2(%arg0: i32) -> (i32, i32) {
    %c0_i32 = arith.constant 0 : i32
    %c0_i32_0 = arith.constant 0 : i32
    %c0_i32_1 = arith.constant 0 : i32
    return %c0_i32, %c0_i32_0 : i32, i32
  }
  func.func @transform_3(%arg0: i32) -> (i32, i32) {
    %c0_i32 = arith.constant 0 : i32
    %c0_i32_0 = arith.constant 0 : i32
    %c0_i32_1 = arith.constant 0 : i32
    return %c0_i32, %c0_i32_0 : i32, i32
  }
  func.func @transform_4(%arg0: i32) -> (i32, i32) {
    %c0_i32 = arith.constant 0 : i32
    %c0_i32_0 = arith.constant 0 : i32
    %c0_i32_1 = arith.constant 0 : i32
    return %c0_i32, %c0_i32_0 : i32, i32
  }
  func.func @transform_5(%arg0: i32) -> (i32, i32) {
    %c0_i32 = arith.constant 0 : i32
    %c0_i32_0 = arith.constant 0 : i32
    %c0_i32_1 = arith.constant 0 : i32
    return %c0_i32, %c0_i32_0 : i32, i32
  }
  func.func @transform_6(%arg0: i32) -> (i32, i32) {
    %c0_i32 = arith.constant 0 : i32
    %c0_i32_0 = arith.constant 0 : i32
    %c0_i32_1 = arith.constant 0 : i32
    return %c0_i32, %c0_i32_0 : i32, i32
  }
  func.func @transform_7(%arg0: i32) -> (i32, i32) {
    %c0_i32 = arith.constant 0 : i32
    %c0_i32_0 = arith.constant 0 : i32
    %c0_i32_1 = arith.constant 0 : i32
    return %c0_i32, %c0_i32_0 : i32, i32
  }
  func.func @transform_8(%arg0: i32) -> (i32, i32) {
    %c0_i32 = arith.constant 0 : i32
    %c0_i32_0 = arith.constant 0 : i32
    %c0_i32_1 = arith.constant 0 : i32
    return %c0_i32, %c0_i32_0 : i32, i32
  }
  func.func @transform_9(%arg0: i32) -> (i32, i32) {
    %c0_i32 = arith.constant 0 : i32
    %c0_i32_0 = arith.constant 0 : i32
    return %arg0, %c0_i32 : i32, i32
  }
}

</mosaic_0001>

<bundles_post_ra>
// kernel: mlp_forward.1
= control target key start
LH: loop header
LB: loop body
LE: loop exit
PB: predicated region body
PF: predicated region fallthrough
CT: control target
= control target key end

     0   :  { %s911_s0 = inlined_call_operand.vmem [shape: f32[8,32], index: 0, kind: input, shape index: {}]   ;;  %s912_s1 = inlined_call_operand.hbm [shape: bf16[32,256], index: 1, kind: input, shape index: {}]   ;;  %s913_s2 = inlined_call_operand.vmem [shape: f32[1,256], index: 2, kind: input, shape index: {}]   ;;  %s914_s3 = inlined_call_operand.vmem [shape: bf16[256,128], index: 3, kind: input, shape index: {}]   ;;  %s915_s4 = inlined_call_operand.vmem [shape: f32[1,128], index: 4, kind: input, shape index: {}]   ;;  %s916_s5 = inlined_call_operand.vmem [shape: bf16[128,64], index: 5, kind: input, shape index: {}]   ;;  %s917_s6 = inlined_call_operand.vmem [shape: f32[1,64], index: 6, kind: input, shape index: {}]   ;;  %s918_s7 = inlined_call_operand.vmem [shape: bf16[64,1], index: 7, kind: input, shape index: {}]   ;;  %s919_s8 = inlined_call_operand.<no memory space> [shape: f32[1,1], index: 8, kind: input, shape index: {}]   ;;  %s920_s9 = inlined_call_operand.vmem [shape: f32[8,1], index: 9, kind: output, shape index: {}]  }
   0x1   :  { %v14_v0 = vstv %s919_s8 }
   0x2   :  { %15 = vst [vmem:[#allocation2] sm:$0x1] %v14_v0 }
   0x3   :  { %16 = vsyncpa [#allocation4], 0  ;;  %s741_s11 = smov [#allocation3]   ;;  %s717_s15 = scalar_lea.hbm %s912_s1, 512 }
   0x4   :  { %s24_s12 = sshll.u32 %s741_s11, 4  ;;  %p718_p0 = scmp.ne.s32.totalorder %s912_s1, %s717_s15  ;;  %s25_s12 = int_to_ptr.vmem [resolvable:$true] %s24_s12 }
   0x5   :  { %p721_p1 = scmp.lt.u32.totalorder %s717_s15, %s912_s1 }
   0x7   :  { %p723_p2 = pnand %p721_p1, %p718_p0 }
   0x9   :  { %726 = shalt.err (!%p723_p2)
}
   0xa   :  { %s727_s8 = scalar_lea.vmem %s25_s12, 512  ;;  %p732_p4 = scmp.lt.s32.totalorder %s25_s12, %s25_s12 }
   0xb   :  { %p728_p3 = scmp.ne.s32.totalorder %s25_s12, %s727_s8  ;;  %p733_p5 = scmp.lt.s32.totalorder %s727_s8, %s727_s8 }
   0xd   :  { %p734_p6 = por %p733_p5, %p732_p4 }
   0xf   :  { %p735_p7 = pnand %p734_p6, %p728_p3 }
  0x11   :  { %738 = shalt.err (!%p735_p7)
}
  0x12   :  { %s742_s20 = smov 128   ;;  %s743_s21 = smov 8  }
  0x13   :  { %30 = dma.hbm_to_vmem [thread:$0]  %s912_s1, 512, %s25_s12, [#allocation4], %s742_s20, %s742_s20, %s743_s21  }
  0x14   :  { %739 = dma.done.wait [#allocation4], 512  }
  0x15   :  { %740 = vsyncadd [#allocation4], 4294966784  ;;  %v744_v1 = vmov 0   ;;  %v667_v2 = vld [vmem:[#allocation3 + $0x4] ss:$8 sps:$4 sm:$0xff]   ;;  %vm87_vm0 = vcmask 261120   ;;  %v57_v24 = vlaneseq }
  0x16   :  { %123 = vmatprep.mubr.bf16.mxu0 %v744_v1  ;;  %v669_v3 = vld [vmem:[#allocation3] ss:$8 sps:$4 sm:$0xff]   ;;  %91 = vmatprep.subr.bf16.mxu0 %v667_v2  ;;  %v670_v4 = vld [vmem:[#allocation3 + $0x14] ss:$8 sps:$4 sm:$0xff]   ;;  %v672_v5 = vld [vmem:[#allocation3 + $0x10] ss:$8 sps:$4 sm:$0xff]  }
  0x17   :  { %92 = vmatpush1.bf16.msra.mxu0 %v669_v3  ;;  %v49_v6 = vld [vmem:[%s911_s0] sm:$0xff]  ;;  %v675_v10 = vld [vmem:[%s914_s3 + $0x48] sm:$0xff]   ;;  %v677_v12 = vld [vmem:[%s914_s3 + $0x50] sm:$0xff]   ;;  %v58_v25 = vshrl.u32 %v57_v24, 7  ;;  %v745_v60 = vmov 0.0   ;;  %vm746_vm3 = vmmov 0  }
  0x18   :  { %93 = vmatprep.subr.bf16.mxu0 %v670_v4  ;;  %v50_v7 = vpack.c.bf16 %v49_v6, %v49_v6  ;;  %v673_v8 = vld [vmem:[%s914_s3 + $0x40] sm:$0xff]   ;;  %v676_v11 = vld [vmem:[%s914_s3 + $0x8] sm:$0xff]   ;;  %v678_v13 = vld [vmem:[%s914_s3 + $0x10] sm:$0xff]   ;;  %vm505_vm6 = vcmask 523264   ;;  %vm549_vm7 = vcmask 7168  }
  0x19   :  { %v674_v9 = vld [vmem:[%s914_s3] sm:$0xff]   ;;  %593 = vmatprep.subr.bf16.mxu1 %v673_v8  ;;  %v679_v14 = vld [vmem:[%s914_s3 + $0x58] sm:$0xff]   ;;  %v683_v18 = vld [vmem:[%s914_s3 + $0x68] sm:$0xff]   ;;  %v59_v26 = vsub.s32 0, %v58_v25  ;;  %v63_v28 = vsub.s32 1, %v58_v25 }
  0x1a   :  { %594 = vmatpush3.bf16.msra.mxu1 %v674_v9  ;;  %v680_v15 = vld [vmem:[%s914_s3 + $0x18] sm:$0xff]   ;;  %v681_v16 = vld [vmem:[%s914_s3 + $0x60] sm:$0xff]   ;;  %v684_v19 = vld [vmem:[%s914_s3 + $0x28] sm:$0xff]  }
  0x1b   :  { %94 = vmatpush1.bf16.msra.mxu0 %v672_v5  ;;  %595 = vmatprep.subr.bf16.mxu1 %v675_v10  ;;  %v682_v17 = vld [vmem:[%s914_s3 + $0x20] sm:$0xff]   ;;  %v685_v20 = vld [vmem:[%s914_s3 + $0x70] sm:$0xff]   ;;  %v687_v22 = vld [vmem:[%s914_s3 + $0x78] sm:$0xff]  }
  0x1c   :  { %v686_v21 = vld [vmem:[%s914_s3 + $0x30] sm:$0xff]   ;;  %v688_v23 = vld [vmem:[%s914_s3 + $0x38] sm:$0xff]   ;;  %v55_v27 = vld [vmem:[%s913_s2] sm:$0x3]  ;;  %629 = vmatprep.subr.bf16.mxu0 %v745_v60 }
  0x1d   :  { %v60_v29 = vrot.slane %v55_v27, %v59_v26  ;;  %v64_v30 = vrot.slane %v55_v27, %v63_v28  ;;  %v689_v59 = vld [vmem:[%s916_s5] sm:$0xff]   ;;  %v690_v61 = vld [vmem:[%s916_s5 + $0x8] sm:$0xff]   ;;  %v691_v62 = vld [vmem:[%s916_s5 + $0x10] sm:$0xff]  }
  0x1e   :  { %560 = vmatmul.mubr.msk.bf16.vlgmr.msra.gmra.mrb[0].mxu0 %vm87_vm0, %v50_v7  ;;  %596 = vmatpush3.bf16.msra.mxu1 %v676_v11  ;;  %v692_v63 = vld [vmem:[%s916_s5 + $0x18] sm:$0xff]   ;;  %v693_v0 = vld [vmem:[%s916_s5 + $0x20] sm:$0xff]   ;;  %v694_v1 = vld [vmem:[%s916_s5 + $0x28] sm:$0xff]  }
  0x1f   :  { %597 = vmatprep.subr.bf16.mxu1 %v677_v12  ;;  %630 = vmatpush3.bf16.msra.mxu0 %v689_v59  ;;  %v695_v2 = vld [vmem:[%s916_s5 + $0x30] sm:$0xff]   ;;  %v696_v3 = vld [vmem:[%s916_s5 + $0x38] sm:$0xff]   ;;  %v561_v5 = vld [vmem:[%s915_s4] ss:$0 sm:$0xff] }
  0x20   :  { %631 = vmatprep.subr.bf16.mxu0 %v745_v60  ;;  %645 = vmatprep.mubr.msk.bf16.mxu0 %vm746_vm3, %v745_v60  ;;  %v699_v24 = vld [vmem:[%s918_s7 + $0x10] sm:$0xff]   ;;  %v700_v25 = vld [vmem:[%s918_s7 + $0x18] sm:$0xff]   ;;  %v578_v26 = vld [vmem:[%s917_s6] ss:$0 sm:$0xff] }
  0x22   :  { %598 = vmatpush3.bf16.msra.mxu1 %v678_v13 }
  0x23   :  { %599 = vmatprep.subr.bf16.mxu1 %v679_v14  ;;  %632 = vmatpush3.bf16.msra.mxu0 %v690_v61 }
  0x24   :  { %633 = vmatprep.subr.bf16.mxu0 %v745_v60 }
  0x26   :  { %600 = vmatpush3.bf16.msra.mxu1 %v680_v15 }
  0x27   :  { %601 = vmatprep.subr.bf16.mxu1 %v681_v16  ;;  %634 = vmatpush3.bf16.msra.mxu0 %v691_v62 }
  0x28   :  { %635 = vmatprep.subr.bf16.mxu0 %v745_v60 }
  0x2a   :  { %602 = vmatpush3.bf16.msra.mxu1 %v682_v17 }
  0x2b   :  { %603 = vmatprep.subr.bf16.mxu1 %v683_v18  ;;  %636 = vmatpush3.bf16.msra.mxu0 %v692_v63 }
  0x2c   :  { %637 = vmatprep.subr.bf16.mxu0 %v745_v60 }
  0x2e   :  { %604 = vmatpush3.bf16.msra.mxu1 %v684_v19 }
  0x2f   :  { %605 = vmatprep.subr.bf16.mxu1 %v685_v20  ;;  %638 = vmatpush3.bf16.msra.mxu0 %v693_v0 }
  0x30   :  { %639 = vmatprep.subr.bf16.mxu0 %v745_v60 }
  0x32   :  { %606 = vmatpush3.bf16.msra.mxu1 %v686_v21 }
  0x33   :  { %607 = vmatprep.subr.bf16.mxu1 %v687_v22  ;;  %640 = vmatpush3.bf16.msra.mxu0 %v694_v1  ;;  %v697_v22 = vld [vmem:[%s918_s7] sm:$0xff]  }
  0x34   :  { %641 = vmatprep.subr.bf16.mxu0 %v745_v60 }
  0x36   :  { %608 = vmatpush3.bf16.msra.mxu1 %v688_v23  ;;  %v698_v23 = vld [vmem:[%s918_s7 + $0x8] sm:$0xff]  }
  0x37   :  { %649 = vmatprep.subr.bf16.mxu1 %v745_v60  ;;  %642 = vmatpush3.bf16.msra.mxu0 %v695_v2 }
  0x38   :  { %643 = vmatprep.subr.bf16.mxu0 %v745_v60 }
  0x3b   :  { %644 = vmatpush3.bf16.msra.mxu0 %v696_v3 }
  0xf1   :  { %v125_v31 = vpop.f32.mrb[0].mxu0 }
  0xf2   :  { %v126_v32 = vadd.f32 %v125_v31, %v60_v29  ;;  %v127_v33 = vpop.f32.mrb[1].mxu0 }
  0xf3   :  { %v128_v34 = vadd.f32 %v127_v33, %v64_v30  ;;  %v129_v35 = vpop.f32.mrb[2].mxu0 }
  0xf4   :  { %v132_v36 = vmin.f32 %v126_v32, 20.0  ;;  %v130_v37 = vpop.f32.mrb[3].mxu0  ;;  %vm148_vm1 = vcmp.gt.f32.partialorder %v126_v32, 20.0 }
  0xf5   :  { %v133_v38 = vmin.f32 %v128_v34, 20.0  ;;  %vm149_vm2 = vcmp.gt.f32.partialorder %v128_v34, 20.0 }
  0xf6   :  { %v134_v39 = vmul.f32 1.442695, %v132_v36 }
  0xf7   :  { %v136_v40 = vmul.f32 1.442695, %v133_v38 }
  0xf8   :  { %701 = vpow2.f32 %v134_v39 }
  0xf9   :  { %703 = vpow2.f32 %v136_v40 }
 0x102   :  { %v702_v41 = vpop.eup %701 }
 0x103   :  { %v704_v42 = vpop.eup %703  ;;  %v138_v43 = vadd.f32 2.0, %v702_v41 }
 0x104   :  { %v139_v44 = vadd.f32 2.0, %v704_v42 }
 0x105   :  { %v140_v45 = vmul.f32 %v702_v41, %v138_v43  ;;  %v587_v43 = vld [vmem:[#allocation2] ss:$0 sm:$0xff] }
 0x106   :  { %v141_v46 = vmul.f32 %v704_v42, %v139_v44 }
 0x107   :  { %v142_v47 = vadd.f32 2.0, %v140_v45 }
 0x108   :  { %v143_v48 = vadd.f32 2.0, %v141_v46 }
 0x109   :  { %705 = vrcp.f32 %v142_v47 }
 0x10a   :  { %707 = vrcp.f32 %v143_v48 }
 0x113   :  { %v706_v49 = vpop.eup %705 }
 0x114   :  { %v708_v50 = vpop.eup %707  ;;  %v146_v51 = vmul.f32 %v706_v49, %v140_v45 }
 0x115   :  { %v147_v52 = vmul.f32 %v708_v50, %v141_v46 }
 0x116   :  { %v150_v53 = vmul.f32 %v146_v51, %v126_v32 }
 0x117   :  { %v151_v54 = vmul.f32 %v147_v52, %v128_v34 }
 0x118   :  { %v152_v55 = vsel %vm148_vm1, %v126_v32, %v150_v53 }
 0x119   :  { %v153_v56 = vsel %vm149_vm2, %v128_v34, %v151_v54  ;;  %v154_v58 = vpack.c.bf16 %v152_v55, %v152_v55 }
 0x11a   :  { %v155_v57 = vpack.c.bf16 %v153_v56, %v153_v56 }
 0x11c   :  { %323 = vmatprep.mubr.bf16.mxu1 %v155_v57 }
 0x11d   :  { %324 = vmatmul.mubr.bf16.vlgmr.msra.gmra.mrb[0].mxu1 %v154_v58 }
 0x11e   :  { %657 = vmatprep.mubr.msk.bf16.mxu1 %vm746_vm3, %v745_v60  ;;  %650 = vmatpush3.bf16.msra.mxu1 %v697_v22 }
 0x11f   :  { %651 = vmatprep.subr.bf16.mxu1 %v745_v60 }
 0x122   :  { %652 = vmatpush3.bf16.msra.mxu1 %v698_v23 }
 0x123   :  { %653 = vmatprep.subr.bf16.mxu1 %v745_v60 }
 0x126   :  { %654 = vmatpush3.bf16.msra.mxu1 %v699_v24 }
 0x127   :  { %655 = vmatprep.subr.bf16.mxu1 %v745_v60 }
 0x12a   :  { %656 = vmatpush3.bf16.msra.mxu1 %v700_v25 }
 0x1f0   :  { %v609_v4 = vpop.f32.mrb[0].mxu1 }
 0x1f1   :  { %v610_v6 = vpop.f32.mrb[1].mxu1 }
 0x1f2   :  { %v611_v7 = vadd.f32 %v610_v6, %v609_v4  ;;  %v612_v8 = vpop.f32.mrb[2].mxu1 }
 0x1f3   :  { %v613_v9 = vpop.f32.mrb[3].mxu1 }
 0x1f4   :  { %v326_v10 = vadd.f32 %v611_v7, %v561_v5 }
 0x1f6   :  { %v331_v11 = vmin.f32 %v326_v10, 20.0  ;;  %vm339_vm4 = vcmp.gt.f32.partialorder %v326_v10, 20.0 }
 0x1f8   :  { %v332_v12 = vmul.f32 1.442695, %v331_v11 }
 0x1fa   :  { %709 = vpow2.f32 %v332_v12 }
 0x204   :  { %v710_v13 = vpop.eup %709 }
 0x205   :  { %v334_v14 = vadd.f32 2.0, %v710_v13 }
 0x207   :  { %v335_v15 = vmul.f32 %v710_v13, %v334_v14 }
 0x209   :  { %v336_v16 = vadd.f32 2.0, %v335_v15 }
 0x20b   :  { %711 = vrcp.f32 %v336_v16 }
 0x215   :  { %v712_v17 = vpop.eup %711 }
 0x216   :  { %v338_v18 = vmul.f32 %v712_v17, %v335_v15 }
 0x218   :  { %v340_v19 = vmul.f32 %v338_v18, %v326_v10 }
 0x21a   :  { %v341_v20 = vsel %vm339_vm4, %v326_v10, %v340_v19 }
 0x21b   :  { %v342_v21 = vpack.c.bf16 %v341_v20, %v341_v20 }
 0x21d   :  { %646 = vmatmul.mubr.bf16.vlgmr.msra.gmra.mrb[4].mxu0 %v342_v21 }
 0x2f0   :  { %v448_v27 = vpop.f32.mrb[4].mxu0 }
 0x2f1   :  { %v449_v28 = vadd.f32 %v578_v26, %v448_v27  ;;  %v647_v29 = vpop.f32.mrb[5].mxu0 }
 0x2f2   :  { %v451_v30 = vpop.f32.mrb[6].mxu0 }
 0x2f3   :  { %v454_v31 = vmin.f32 %v449_v28, 20.0  ;;  %v648_v32 = vpop.f32.mrb[7].mxu0  ;;  %vm462_vm5 = vcmp.gt.f32.partialorder %v449_v28, 20.0 }
 0x2f5   :  { %v455_v33 = vmul.f32 1.442695, %v454_v31 }
 0x2f7   :  { %713 = vpow2.f32 %v455_v33 }
 0x301   :  { %v714_v34 = vpop.eup %713 }
 0x302   :  { %v457_v35 = vadd.f32 2.0, %v714_v34 }
 0x304   :  { %v458_v36 = vmul.f32 %v714_v34, %v457_v35 }
 0x306   :  { %v459_v37 = vadd.f32 2.0, %v458_v36 }
 0x308   :  { %715 = vrcp.f32 %v459_v37 }
 0x312   :  { %v716_v38 = vpop.eup %715 }
 0x313   :  { %v461_v39 = vmul.f32 %v716_v38, %v458_v36 }
 0x315   :  { %v463_v40 = vmul.f32 %v461_v39, %v449_v28 }
 0x317   :  { %v464_v41 = vsel %vm462_vm5, %v449_v28, %v463_v40 }
 0x318   :  { %v465_v42 = vpack.c.bf16 %v464_v41, %v464_v41 }
 0x31a   :  { %658 = vmatmul.mubr.msk.bf16.vlgmr.msra.gmra.mrb[4].mxu1 %vm505_vm6, %v465_v42 }
 0x3ed   :  { %v543_v44 = vpop.f32.mrb[4].mxu1 }
 0x3ee   :  { %v544_v45 = vadd.f32 %v587_v43, %v543_v44  ;;  %v659_v46 = vpop.f32.mrb[5].mxu1 }
 0x3ef   :  { %v546_v47 = vpop.f32.mrb[6].mxu1 }
 0x3f0   :  { %550 = vst.msk [vmem:[%s920_s9] sm:$0xff] %vm549_vm7, %v544_v45  ;;  %v660_v48 = vpop.f32.mrb[7].mxu1 }
 0x3f1   :  { %555 = vsyncpa [#allocation4], 1 }

</bundles_post_ra>
